<compile_context>
chip_gen: v6e
topology: v6e:2x2x1
jax: 0.10.0
libtpu: 0.0.40
codegen_flags: <defaults>
</compile_context>

<pallas_src>
import jax
import jax.numpy as jnp
from jax.experimental import pallas as pl
from jax.experimental.pallas import tpu as pltpu


# --------------------------------------------------------------------------- #
# Kernels
# --------------------------------------------------------------------------- #
def _logits_kernel(x_ref, w_ref, b_ref, o_ref):
    """(tile_m, H) @ (H, tile_n) + bias -> (tile_m, tile_n), full contraction."""
    acc = jnp.dot(x_ref[...], w_ref[...], preferred_element_type=jnp.float32)
    o_ref[...] = (acc + b_ref[...]).astype(o_ref.dtype)


def _logits_kernel_ksplit(x_ref, w_ref, b_ref, o_ref, acc_ref):
    """Same, but the contraction is split over the innermost grid axis."""
    k = pl.program_id(2)

    @pl.when(k == 0)
    def _init():
        acc_ref[...] = jnp.zeros_like(acc_ref)

    acc_ref[...] += jnp.dot(x_ref[...], w_ref[...],
                            preferred_element_type=jnp.float32)

    @pl.when(k == pl.num_programs(2) - 1)
    def _finalize():
        o_ref[...] = (acc_ref[...] + b_ref[...]).astype(o_ref.dtype)


# --------------------------------------------------------------------------- #
# Helpers
# --------------------------------------------------------------------------- #
def _round_up(x, m):
    return (x + m - 1) // m * m


def _cdiv(a, b):
    return -(-a // b)


def _vmem_budget_bytes():
    """~3/4 of physical VMEM: 96 MiB on v5e/v6e (128 MiB), 48 MiB on v7x (64 MiB)."""
    try:
        phys = int(pltpu.get_tpu_info().vmem_capacity_bytes)
    except Exception:
        phys = 64 * 1024 * 1024  # conservative fallback (v7x-sized)
    return max(32 * 1024 * 1024, (phys * 3) // 4)


_TARGET_TILE_M = 512                 # target rows/tile in the streaming regime
_SMALL_X_BYTES = 4 * 1024 * 1024     # keep activation fully resident below this


def _select_tiles(M, H, V_pad, cd_bytes, out_bytes, budget):
    # ---- contraction (K) tiling: full H unless very large -------------------
    tile_k = H
    if H > 4096 and H % 128 == 0:
        for cand in (4096, 3584, 3072, 2560, 2048, 1536, 1024, 512, 256, 128):
            if H % cand == 0:
                tile_k = cand
                break
    # TODO(synk): if H > 4096 and H % 128 != 0 we keep tile_k == H (correct but
    # VMEM-heavy); padding H per call would add a weight-sized HBM pass.
    num_k = H // tile_k

    # ---- row (M) tiling ------------------------------------------------------
    small_m = _round_up(M, 8)
    if small_m * tile_k * cd_bytes <= _SMALL_X_BYTES:
        tile_m = small_m                              # activation stays resident
    else:
        n_tiles = _cdiv(M, _TARGET_TILE_M)
        tile_m = _round_up(_cdiv(M, n_tiles), 8)      # minimize M_pad - M
    num_m = _cdiv(M, tile_m)
    M_pad = num_m * tile_m

    # ---- vocab (N) tiling: as large as the VMEM budget allows ---------------
    tile_n = 128
    for cand in (2048, 1024, 512, 256, 128):
        if cand > V_pad or V_pad % cand != 0:
            continue
        need = 2 * (tile_m * tile_k * cd_bytes        # x tile (double buffered)
                    + tile_k * cand * cd_bytes        # weight slab
                    + tile_m * cand * out_bytes       # output tile
                    + cand * 4)                       # bias slab (f32)
        if num_k > 1:
            need += tile_m * cand * 4                 # f32 accumulator scratch
        if need <= budget:
            tile_n = cand
            break
    num_n = V_pad // tile_n
    return tile_m, tile_n, tile_k, num_m, num_n, num_k, M_pad


# --------------------------------------------------------------------------- #
# Parameter prep (one-time) + forward
# --------------------------------------------------------------------------- #
def prepare_crowd_predictor_params(weight, bias, *, compute_dtype=jnp.bfloat16,
                                   lane_pad=512):
    """One-time parameter prep (do NOT call per forward).

    weight: (V, H) as in torch.nn.Linear; bias: (V,).
    Returns (weight_t, bias2): (H, V_pad) in compute_dtype, (1, V_pad) f32.
    """
    V, H = weight.shape
    V_pad = _round_up(V, lane_pad)
    wt = jnp.asarray(weight).T.astype(compute_dtype)
    b2 = jnp.asarray(bias).astype(jnp.float32).reshape(1, V)
    if V_pad != V:
        wt = jnp.pad(wt, ((0, 0), (0, V_pad - V)))
        b2 = jnp.pad(b2, ((0, 0), (0, V_pad - V)))
    return wt, b2


def crowd_predictor_forward(hidden_states, weight_t, bias2, *, vocab_size,
                            dropout_rate=0.0, training=False, rng_key=None,
                            out_dtype=None):
    """logits = dropout(hidden_states) @ weight_t + bias via Pallas.

    hidden_states: (B, S, H) array, or a list of such (last one is used).
    weight_t/bias2: outputs of prepare_crowd_predictor_params.
    Returns (B, S, vocab_size) logits in `out_dtype` (default: input dtype).
    """
    # Module accepts an array or a list of hidden states (uses the last one).
    if isinstance(hidden_states, (list, tuple)):
        hidden_states = hidden_states[-1]

    B, S, H = hidden_states.shape
    Hw, V_pad = weight_t.shape
    assert Hw == H, "weight_t must be (H, V_pad)"
    V = int(vocab_size)
    out_dtype = out_dtype or hidden_states.dtype
    compute_dtype = weight_t.dtype

    # Dropout (inverted), training only; applied once over the small activation.
    # TODO(synk): fuse into the kernel with pltpu.prng_* + scalar-prefetched seed
    # (activation-resident layout already guarantees a single visit per x tile).
    if training and dropout_rate > 0.0:
        if rng_key is None:
            rng_key = jax.random.PRNGKey(0)  # caller should pass a fresh key
        keep_prob = 1.0 - float(dropout_rate)
        keep = jax.random.bernoulli(rng_key, p=keep_prob,
                                    shape=hidden_states.shape)
        hidden_states = jnp.where(keep, hidden_states / keep_prob,
                                  jnp.zeros_like(hidden_states))

    M = B * S
    x = hidden_states.reshape(M, H).astype(compute_dtype)

    cd_bytes = jnp.dtype(compute_dtype).itemsize
    out_bytes = jnp.dtype(out_dtype).itemsize
    budget = _vmem_budget_bytes()
    tile_m, tile_n, tile_k, num_m, num_n, num_k, M_pad = _select_tiles(
        M, H, V_pad, cd_bytes, out_bytes, budget)

    if M_pad != M:
        x = jnp.pad(x, ((0, M_pad - M), (0, 0)))  # cheap: activation side only

    # Loop order: the outer-axis operand is fetched once per outer step; the
    # other is re-streamed `num_outer` times.  Keep the cheaper re-stream.
    if num_m == 1:
        use_n_outer = True     # x resident either way; parallelize over vocab
    elif num_n == 1:
        use_n_outer = False    # weight resident either way; parallelize over rows
    else:
        use_n_outer = M_pad * (num_n - 1) <= V_pad * (num_m - 1)

    if num_k == 1:
        kernel = _logits_kernel
        scratch = []
        if use_n_outer:
            grid = (num_n, num_m)
            x_map = lambda n, m: (m, 0)
            w_map = lambda n, m: (0, n)
            b_map = lambda n, m: (0, n)
            o_map = lambda n, m: (m, n)
        else:
            grid = (num_m, num_n)
            x_map = lambda m, n: (m, 0)
            w_map = lambda m, n: (0, n)
            b_map = lambda m, n: (0, n)
            o_map = lambda m, n: (m, n)
        semantics = ("parallel", "arbitrary")
    else:
        kernel = _logits_kernel_ksplit
        scratch = [pltpu.VMEM((tile_m, tile_n), jnp.float32)]
        if use_n_outer:
            grid = (num_n, num_m, num_k)
            x_map = lambda n, m, k: (m, k)
            w_map = lambda n, m, k: (k, n)
            b_map = lambda n, m, k: (0, n)
            o_map = lambda n, m, k: (m, n)
        else:
            grid = (num_m, num_n, num_k)
            x_map = lambda m, n, k: (m, k)
            w_map = lambda m, n, k: (k, n)
            b_map = lambda m, n, k: (0, n)
            o_map = lambda m, n, k: (m, n)
        semantics = ("parallel", "arbitrary", "arbitrary")

    out = pl.pallas_call(
        kernel,
        out_shape=jax.ShapeDtypeStruct((M_pad, V_pad), out_dtype),
        grid=grid,
        in_specs=[
            pl.BlockSpec((tile_m, tile_k), x_map),   # activations
            pl.BlockSpec((tile_k, tile_n), w_map),   # weight slab
            pl.BlockSpec((1, tile_n), b_map),        # bias slab (f32)
        ],
        out_specs=pl.BlockSpec((tile_m, tile_n), o_map),
        scratch_shapes=scratch,
        compiler_params=pltpu.CompilerParams(
            dimension_semantics=semantics,
            vmem_limit_bytes=int(budget),
        ),
    )(x, weight_t, bias2)

    if M_pad != M or V_pad != V:
        out = out[:M, :V]
    return out.reshape(B, S, V)


# --------------------------------------------------------------------------- #
# Demo / self-test
# --------------------------------------------------------------------------- #
if __name__ == "__main__":
    # Small config consistent with the module: hidden_size=128, vocab_size=512.
    B, S, H, V = 2, 8, 128, 512
    dropout_rate = 0.1

    key = jax.random.PRNGKey(0)
    k_h0, k_h1, k_w, k_b, k_drop = jax.random.split(key, 5)

    # The module accepts an array or a list of hidden states (takes the last).
    hidden_states_list = [
        jax.random.normal(k_h0, (B, S, H), dtype=jnp.float32),
        jax.random.normal(k_h1, (B, S, H), dtype=jnp.float32),
    ]
    hidden_states = hidden_states_list[-1]

    # Deterministic parameters (PyTorch nn.Linear: weight (V, H), bias (V,)).
    weight = jax.random.normal(k_w, (V, H), dtype=jnp.float32) / jnp.sqrt(H)
    bias = jax.random.normal(k_b, (V,), dtype=jnp.float32) * 0.01

    # High-precision reference.
    ref = (jnp.einsum("md,vd->mv", hidden_states.reshape(B * S, H), weight,
                      precision=jax.lax.Precision.HIGHEST)
           + bias[None, :]).reshape(B, S, V)

    # f32 compute path (exactness check; list input exercised here).
    wt32, b32 = prepare_crowd_predictor_params(weight, bias,
                                               compute_dtype=jnp.float32)
    logits32 = crowd_predictor_forward(hidden_states_list, wt32, b32,
                                       vocab_size=V, dropout_rate=dropout_rate,
                                       training=False)
    logits32 = jax.block_until_ready(logits32)
    assert logits32.shape == (B, S, V)
    assert jnp.allclose(logits32, ref, atol=1e-3, rtol=1e-3)

    # Default bf16 perf path (weight pre-cast once; looser tolerance).
    wt_bf, b_bf = prepare_crowd_predictor_params(weight, bias)  # bf16 default
    logits_bf = crowd_predictor_forward(hidden_states, wt_bf, b_bf,
                                        vocab_size=V, training=False)
    logits_bf = jax.block_until_ready(logits_bf)
    assert logits_bf.shape == (B, S, V)
    assert jnp.allclose(logits_bf, ref, atol=1e-1, rtol=1e-1)

    # Training path (dropout active; deterministic for the given key).
    logits_tr = crowd_predictor_forward(hidden_states, wt_bf, b_bf,
                                        vocab_size=V, dropout_rate=dropout_rate,
                                        training=True, rng_key=k_drop)
    logits_tr = jax.block_until_ready(logits_tr)
    assert logits_tr.shape == (B, S, V)
    assert bool(jnp.all(jnp.isfinite(logits_tr)))

    print("KERNEL_OK")
</pallas_src>

<mosaic_0001>
module attributes {stable_mosaic.version = 11 : i64} {
  func.func @_logits_kernel(%arg0: i32, %arg1: i32, %arg2: memref<16x128xf32, #tpu.memory_space<vmem>>, %arg3: memref<128x512xf32, #tpu.memory_space<vmem>>, %arg4: memref<1x512xf32, #tpu.memory_space<vmem>>, %arg5: memref<16x512xf32, #tpu.memory_space<vmem>>) attributes {dimension_semantics = [#tpu.dimension_semantics<parallel>, #tpu.dimension_semantics<arbitrary>], iteration_bounds = array<i64: 1, 1>, scalar_prefetch = 0 : i64, scratch_operands = 0 : i64, tpu.core_type = #tpu.core_type<tc>, window_params = [{transform_indices = @transform_0, window_bounds = array<i64: 16, 128>}, {transform_indices = @transform_1, window_bounds = array<i64: 128, 512>}, {transform_indices = @transform_2, window_bounds = array<i64: 1, 512>}, {transform_indices = @transform_3, window_bounds = array<i64: 16, 512>}]} {
    %c0 = arith.constant 0 : index
    %c0_0 = arith.constant 0 : index
    %0 = vector.load %arg2[%c0, %c0_0] : memref<16x128xf32, #tpu.memory_space<vmem>>, vector<16x128xf32>
    %c0_1 = arith.constant 0 : index
    %c0_2 = arith.constant 0 : index
    %1 = vector.load %arg3[%c0_1, %c0_2] : memref<128x512xf32, #tpu.memory_space<vmem>>, vector<128x512xf32>
    %cst = arith.constant dense<0.000000e+00> : vector<16x512xf32>
    %2 = tpu.matmul %0, %1, %cst {dimension_numbers = #tpu.dot_dimension_numbers<[1], [0], [0], [1], [0, 0, 1, 1], [], []>} : vector<16x128xf32>, vector<128x512xf32>, vector<16x512xf32> -> vector<16x512xf32>
    %c0_3 = arith.constant 0 : index
    %c0_4 = arith.constant 0 : index
    %3 = vector.load %arg4[%c0_3, %c0_4] : memref<1x512xf32, #tpu.memory_space<vmem>>, vector<1x512xf32>
    %4 = vector.broadcast %3 : vector<1x512xf32> to vector<16x512xf32>
    %5 = arith.addf %2, %4 : vector<16x512xf32>
    %c0_5 = arith.constant 0 : index
    %c0_6 = arith.constant 0 : index
    %6 = vector.load %arg5[%c0_5, %c0_6] : memref<16x512xf32, #tpu.memory_space<vmem>>, vector<16x512xf32>
    tpu.vector_store %arg5[%c0_5, %c0_6], %5 {strides = array<i32>} : memref<16x512xf32, #tpu.memory_space<vmem>>, vector<16x512xf32>,
    return
  }
  func.func @transform_0(%arg0: i32, %arg1: i32) -> (i32, i32) {
    %c0_i32 = arith.constant 0 : i32
    %c0_i32_0 = arith.constant 0 : i32
    return %arg1, %c0_i32 : i32, i32
  }
  func.func @transform_1(%arg0: i32, %arg1: i32) -> (i32, i32) {
    %c0_i32 = arith.constant 0 : i32
    %c0_i32_0 = arith.constant 0 : i32
    return %c0_i32, %arg0 : i32, i32
  }
  func.func @transform_2(%arg0: i32, %arg1: i32) -> (i32, i32) {
    %c0_i32 = arith.constant 0 : i32
    %c0_i32_0 = arith.constant 0 : i32
    return %c0_i32, %arg0 : i32, i32
  }
  func.func @transform_3(%arg0: i32, %arg1: i32) -> (i32, i32) {
    %c0_i32 = arith.constant 0 : i32
    return %arg1, %arg0 : i32, i32
  }
}

</mosaic_0001>

<bundles_post_ra>
// kernel: tpu_custom_call.1
= control target key start
LH: loop header
LB: loop body
LE: loop exit
PB: predicated region body
PF: predicated region fallthrough
CT: control target
= control target key end

     0   :  { %8 = vsyncpa [#allocation3], 0  ;;  %s468_s0 = inlined_call_operand.hbm [shape: f32[16,128], index: 0, kind: input, shape index: {}]   ;;  %s469_s1 = inlined_call_operand.hbm [shape: f32[128,512], index: 1, kind: input, shape index: {}]   ;;  %s470_s2 = inlined_call_operand.hbm [shape: f32[1,512], index: 2, kind: input, shape index: {}]   ;;  %s471_s3 = inlined_call_operand.hbm [shape: f32[16,512], index: 3, kind: output, shape index: {}]  }
   0x1   :  { %9 = vsyncpa [#allocation6], 0 }
   0x2   :  { %10 = vsyncpa [#allocation4], 0  ;;  %s417_s12 = smov [#allocation5]  }
   0x3   :  { %s28_s13 = sshll.u32 %s417_s12, 4  ;;  %s29_s13 = int_to_ptr.vmem [resolvable:$true] %s28_s13 }
   0x4   :  { %s339_s14 = scalar_lea.vmem %s29_s13, 8192  ;;  %p344_p1 = scmp.lt.s32.totalorder %s29_s13, %s29_s13 }
   0x5   :  { %p340_p0 = scmp.ne.s32.totalorder %s29_s13, %s339_s14  ;;  %p345_p2 = scmp.lt.s32.totalorder %s339_s14, %s339_s14 }
   0x7   :  { %p346_p3 = por %p345_p2, %p344_p1 }
   0x9   :  { %p347_p4 = pnand %p346_p3, %p340_p0 }
   0xb   :  { %350 = shalt.err (!%p347_p4)
}
   0xc   :  { %s418_s15 = smov 512   ;;  %s419_s16 = smov 32  }
   0xd   :  { %34 = dma.hbm_to_vmem [thread:$0]  %s469_s1, 8192, %s29_s13, [#allocation6], %s418_s15, %s418_s15, %s419_s16  }
   0xe   :  { %s420_s19 = smov [#allocation2]  }
   0xf   :  { %s16_s20 = sshll.u32 %s420_s19, 4  ;;  %s17_s20 = int_to_ptr.vmem [resolvable:$true] %s16_s20 }
  0x10   :  { %s359_s21 = scalar_lea.vmem %s17_s20, 256  ;;  %p364_p6 = scmp.lt.s32.totalorder %s17_s20, %s17_s20 }
  0x11   :  { %p360_p5 = scmp.ne.s32.totalorder %s17_s20, %s359_s21  ;;  %p365_p7 = scmp.lt.s32.totalorder %s359_s21, %s359_s21 }
  0x13   :  { %p366_p8 = por %p365_p7, %p364_p6 }
  0x15   :  { %p367_p9 = pnand %p366_p8, %p360_p5 }
  0x17   :  { %370 = shalt.err (!%p367_p9)
}
  0x18   :  { %s421_s22 = smov 128   ;;  %s422_s23 = smov 8  }
  0x19   :  { %22 = dma.hbm_to_vmem [thread:$0]  %s468_s0, 256, %s17_s20, [#allocation3], %s421_s22, %s421_s22, %s422_s23  }
  0x1a   :  { %s423_s26 = smov [#allocation7]  }
  0x1b   :  { %s41_s27 = sshll.u32 %s423_s26, 4  ;;  %s42_s27 = int_to_ptr.vmem [resolvable:$true] %s41_s27 }
  0x1c   :  { %s379_s1 = scalar_lea.vmem %s42_s27, 64  ;;  %p384_p11 = scmp.lt.s32.totalorder %s42_s27, %s42_s27 }
  0x1d   :  { %p380_p10 = scmp.ne.s32.totalorder %s42_s27, %s379_s1  ;;  %p385_p12 = scmp.lt.s32.totalorder %s379_s1, %s379_s1 }
  0x1f   :  { %p386_p13 = por %p385_p12, %p384_p11 }
  0x21   :  { %p387_p0 = pnand %p386_p13, %p380_p10 }
  0x23   :  { %390 = shalt.err (!%p387_p0)
}
  0x24   :  { %44 = dma.hbm_to_vmem [thread:$0]  %s470_s2, 64, %s42_s27, [#allocation6]  }
  0x25   :  { %411 = dma.done.wait [#allocation3], 256  }
  0x26   :  { %412 = vsyncadd [#allocation3], 4294967040 }
  0x27   :  { %413 = dma.done.wait [#allocation6], 8256  }
  0x28   :  { %414 = vsyncadd [#allocation6], 4294959040  ;;  %v424_v0 = vmov 0.0   ;;  %v117_v1 = vld [vmem:[#allocation5 + $0x1e8] sm:$0xff]  ;;  %v119_v2 = vld [vmem:[#allocation5 + $0x1f8] sm:$0xff]  ;;  %s425_s0 = smov [#allocation8]  }
  0x29   :  { %206 = vmatprep.mubr.f32.mxu0 %v424_v0  ;;  %283 = vmatprep.mubr.f32.mxu1 %v424_v0  ;;  %v116_v3 = vld [vmem:[#allocation5 + $0x1e0] sm:$0xff]  ;;  %v118_v4 = vld [vmem:[#allocation5 + $0x1f0] sm:$0xff]  ;;  %v113_v5 = vld [vmem:[#allocation5 + $0x1c8] sm:$0xff]  ;;  %s309_s2 = sshll.u32 %s425_s0, 4  ;;  %s310_s2 = int_to_ptr.vmem [resolvable:$true] %s309_s2 }
  0x2a   :  { %142 = vmatprep.subr.mxu0 %v117_v1  ;;  %219 = vmatprep.subr.mxu1 %v119_v2  ;;  %v115_v6 = vld [vmem:[#allocation5 + $0x1d8] sm:$0xff]  ;;  %v112_v7 = vld [vmem:[#allocation5 + $0x1c0] sm:$0xff]  ;;  %v114_v8 = vld [vmem:[#allocation5 + $0x1d0] sm:$0xff]  ;;  %s391_s30 = scalar_lea.vmem %s310_s2, 1024  ;;  %p396_p2 = scmp.lt.s32.totalorder %s310_s2, %s310_s2 }
  0x2b   :  { %143 = vmatpush1.msra.mxu0 %v116_v3  ;;  %220 = vmatpush1.msra.mxu1 %v118_v4  ;;  %v109_v9 = vld [vmem:[#allocation5 + $0x1a8] sm:$0xff]  ;;  %v111_v10 = vld [vmem:[#allocation5 + $0x1b8] sm:$0xff]  ;;  %v108_v11 = vld [vmem:[#allocation5 + $0x1a0] sm:$0xff]  ;;  %v122_v4 = vlaneseq  ;;  %p392_p1 = scmp.ne.s32.totalorder %s310_s2, %s391_s30  ;;  %p397_p3 = scmp.lt.s32.totalorder %s391_s30, %s391_s30 }
  0x2c   :  { %144 = vmatprep.subr.mxu0 %v113_v5  ;;  %221 = vmatprep.subr.mxu1 %v115_v6  ;;  %v110_v12 = vld [vmem:[#allocation5 + $0x1b0] sm:$0xff]  ;;  %v105_v13 = vld [vmem:[#allocation5 + $0x188] sm:$0xff]  ;;  %v107_v14 = vld [vmem:[#allocation5 + $0x198] sm:$0xff] }
  0x2d   :  { %145 = vmatpush1.msra.mxu0 %v112_v7  ;;  %222 = vmatpush1.msra.mxu1 %v114_v8  ;;  %v104_v15 = vld [vmem:[#allocation5 + $0x180] sm:$0xff]  ;;  %v106_v16 = vld [vmem:[#allocation5 + $0x190] sm:$0xff]  ;;  %v101_v17 = vld [vmem:[#allocation5 + $0x168] sm:$0xff]  ;;  %v123_v5 = vshrl.u32 %v122_v4, 7  ;;  %p398_p4 = por %p397_p3, %p396_p2 }
  0x2e   :  { %146 = vmatprep.subr.mxu0 %v109_v9  ;;  %223 = vmatprep.subr.mxu1 %v111_v10  ;;  %v103_v18 = vld [vmem:[#allocation5 + $0x178] sm:$0xff]  ;;  %v100_v19 = vld [vmem:[#allocation5 + $0x160] sm:$0xff]  ;;  %v102_v20 = vld [vmem:[#allocation5 + $0x170] sm:$0xff] }
  0x2f   :  { %147 = vmatpush1.msra.mxu0 %v108_v11  ;;  %224 = vmatpush1.msra.mxu1 %v110_v12  ;;  %v97_v21 = vld [vmem:[#allocation5 + $0x148] sm:$0xff]  ;;  %v99_v22 = vld [vmem:[#allocation5 + $0x158] sm:$0xff]  ;;  %v96_v23 = vld [vmem:[#allocation5 + $0x140] sm:$0xff]  ;;  %v124_v6 = vsub.s32 0, %v123_v5  ;;  %v132_v7 = vsub.s32 2, %v123_v5  ;;  %v128_v9 = vsub.s32 1, %v123_v5  ;;  %p399_p5 = pnand %p398_p4, %p392_p1 }
  0x30   :  { %148 = vmatprep.subr.mxu0 %v105_v13  ;;  %225 = vmatprep.subr.mxu1 %v107_v14  ;;  %v98_v24 = vld [vmem:[#allocation5 + $0x150] sm:$0xff]  ;;  %v93_v25 = vld [vmem:[#allocation5 + $0x128] sm:$0xff]  ;;  %v95_v26 = vld [vmem:[#allocation5 + $0x138] sm:$0xff]  ;;  %v136_v10 = vsub.s32 3, %v123_v5 }
  0x31   :  { %149 = vmatpush1.msra.mxu0 %v104_v15  ;;  %226 = vmatpush1.msra.mxu1 %v106_v16  ;;  %v92_v27 = vld [vmem:[#allocation5 + $0x120] sm:$0xff]  ;;  %v94_v28 = vld [vmem:[#allocation5 + $0x130] sm:$0xff]  ;;  %v89_v29 = vld [vmem:[#allocation5 + $0x108] sm:$0xff] }
  0x32   :  { %150 = vmatprep.subr.mxu0 %v101_v17  ;;  %227 = vmatprep.subr.mxu1 %v103_v18  ;;  %v91_v30 = vld [vmem:[#allocation5 + $0x118] sm:$0xff]  ;;  %v88_v31 = vld [vmem:[#allocation5 + $0x100] sm:$0xff]  ;;  %v90_v32 = vld [vmem:[#allocation5 + $0x110] sm:$0xff] }
  0x33   :  { %151 = vmatpush1.msra.mxu0 %v100_v19  ;;  %228 = vmatpush1.msra.mxu1 %v102_v20  ;;  %v85_v33 = vld [vmem:[#allocation5 + $0xe8] sm:$0xff]  ;;  %v87_v34 = vld [vmem:[#allocation5 + $0xf8] sm:$0xff]  ;;  %v84_v35 = vld [vmem:[#allocation5 + $0xe0] sm:$0xff] }
  0x34   :  { %152 = vmatprep.subr.mxu0 %v97_v21  ;;  %229 = vmatprep.subr.mxu1 %v99_v22  ;;  %v86_v36 = vld [vmem:[#allocation5 + $0xf0] sm:$0xff]  ;;  %v81_v37 = vld [vmem:[#allocation5 + $0xc8] sm:$0xff]  ;;  %v83_v38 = vld [vmem:[#allocation5 + $0xd8] sm:$0xff] }
  0x35   :  { %153 = vmatpush1.msra.mxu0 %v96_v23  ;;  %230 = vmatpush1.msra.mxu1 %v98_v24  ;;  %v80_v39 = vld [vmem:[#allocation5 + $0xc0] sm:$0xff]  ;;  %v82_v40 = vld [vmem:[#allocation5 + $0xd0] sm:$0xff]  ;;  %v77_v41 = vld [vmem:[#allocation5 + $0xa8] sm:$0xff] }
  0x36   :  { %154 = vmatprep.subr.mxu0 %v93_v25  ;;  %231 = vmatprep.subr.mxu1 %v95_v26  ;;  %v79_v42 = vld [vmem:[#allocation5 + $0xb8] sm:$0xff]  ;;  %v76_v43 = vld [vmem:[#allocation5 + $0xa0] sm:$0xff]  ;;  %v78_v44 = vld [vmem:[#allocation5 + $0xb0] sm:$0xff] }
  0x37   :  { %155 = vmatpush1.msra.mxu0 %v92_v27  ;;  %232 = vmatpush1.msra.mxu1 %v94_v28  ;;  %v73_v45 = vld [vmem:[#allocation5 + $0x88] sm:$0xff]  ;;  %v75_v46 = vld [vmem:[#allocation5 + $0x98] sm:$0xff]  ;;  %v72_v47 = vld [vmem:[#allocation5 + $0x80] sm:$0xff] }
  0x38   :  { %156 = vmatprep.subr.mxu0 %v89_v29  ;;  %233 = vmatprep.subr.mxu1 %v91_v30  ;;  %v74_v48 = vld [vmem:[#allocation5 + $0x90] sm:$0xff]  ;;  %v69_v49 = vld [vmem:[#allocation5 + $0x68] sm:$0xff]  ;;  %v71_v50 = vld [vmem:[#allocation5 + $0x78] sm:$0xff] }
  0x39   :  { %157 = vmatpush1.msra.mxu0 %v88_v31  ;;  %234 = vmatpush1.msra.mxu1 %v90_v32  ;;  %v68_v51 = vld [vmem:[#allocation5 + $0x60] sm:$0xff]  ;;  %v70_v52 = vld [vmem:[#allocation5 + $0x70] sm:$0xff]  ;;  %v65_v53 = vld [vmem:[#allocation5 + $0x48] sm:$0xff] }
  0x3a   :  { %158 = vmatprep.subr.mxu0 %v85_v33  ;;  %235 = vmatprep.subr.mxu1 %v87_v34  ;;  %v67_v54 = vld [vmem:[#allocation5 + $0x58] sm:$0xff]  ;;  %v64_v55 = vld [vmem:[#allocation5 + $0x40] sm:$0xff]  ;;  %v66_v56 = vld [vmem:[#allocation5 + $0x50] sm:$0xff] }
  0x3b   :  { %159 = vmatpush1.msra.mxu0 %v84_v35  ;;  %236 = vmatpush1.msra.mxu1 %v86_v36  ;;  %v61_v57 = vld [vmem:[#allocation5 + $0x28] sm:$0xff]  ;;  %v63_v58 = vld [vmem:[#allocation5 + $0x38] sm:$0xff]  ;;  %v60_v59 = vld [vmem:[#allocation5 + $0x20] sm:$0xff] }
  0x3c   :  { %160 = vmatprep.subr.mxu0 %v81_v37  ;;  %237 = vmatprep.subr.mxu1 %v83_v38  ;;  %v62_v60 = vld [vmem:[#allocation5 + $0x30] sm:$0xff]  ;;  %v57_v61 = vld [vmem:[#allocation5 + $0x8] sm:$0xff]  ;;  %v59_v62 = vld [vmem:[#allocation5 + $0x18] sm:$0xff] }
  0x3d   :  { %161 = vmatpush1.msra.mxu0 %v80_v39  ;;  %238 = vmatpush1.msra.mxu1 %v82_v40  ;;  %v56_v63 = vld [vmem:[#allocation5] sm:$0xff]  ;;  %v58_v1 = vld [vmem:[#allocation5 + $0x10] sm:$0xff]  ;;  %v55_v3 = vld [vmem:[#allocation2 + $0x8] sm:$0xff] }
  0x3e   :  { %162 = vmatprep.subr.mxu0 %v77_v41  ;;  %239 = vmatprep.subr.mxu1 %v79_v42  ;;  %v54_v2 = vld [vmem:[#allocation2] sm:$0xff]  ;;  %v120_v8 = vld [vmem:[#allocation7] sm:$0xf] }
  0x3f   :  { %163 = vmatpush1.msra.mxu0 %v76_v43  ;;  %240 = vmatpush1.msra.mxu1 %v78_v44  ;;  %v125_v11 = vrot.slane %v120_v8, %v124_v6  ;;  %v133_v12 = vrot.slane %v120_v8, %v132_v7  ;;  %v129_v13 = vrot.slane %v120_v8, %v128_v9 }
  0x40   :  { %164 = vmatprep.subr.mxu0 %v73_v45  ;;  %241 = vmatprep.subr.mxu1 %v75_v46  ;;  %v137_v14 = vrot.slane %v120_v8, %v136_v10 }
  0x41   :  { %165 = vmatpush1.msra.mxu0 %v72_v47  ;;  %242 = vmatpush1.msra.mxu1 %v74_v48 }
  0x42   :  { %166 = vmatprep.subr.mxu0 %v69_v49  ;;  %243 = vmatprep.subr.mxu1 %v71_v50 }
  0x43   :  { %167 = vmatpush1.msra.mxu0 %v68_v51  ;;  %244 = vmatpush1.msra.mxu1 %v70_v52 }
  0x44   :  { %168 = vmatprep.subr.mxu0 %v65_v53  ;;  %245 = vmatprep.subr.mxu1 %v67_v54 }
  0x45   :  { %169 = vmatpush1.msra.mxu0 %v64_v55  ;;  %246 = vmatpush1.msra.mxu1 %v66_v56 }
  0x46   :  { %170 = vmatprep.subr.mxu0 %v61_v57  ;;  %247 = vmatprep.subr.mxu1 %v63_v58 }
  0x47   :  { %171 = vmatpush1.msra.mxu0 %v60_v59  ;;  %248 = vmatpush1.msra.mxu1 %v62_v60 }
  0x48   :  { %172 = vmatprep.subr.mxu0 %v57_v61  ;;  %249 = vmatprep.subr.mxu1 %v59_v62 }
  0x49   :  { %173 = vmatpush1.msra.mxu0 %v56_v63  ;;  %250 = vmatpush1.msra.mxu1 %v58_v1 }
  0x4a   :  { %207 = vmatmul.mubr.f32.vlgmr.msra.gmra.mxu0 %v54_v2  ;;  %284 = vmatmul.mubr.f32.vlgmr.msra.gmra.mxu1 %v54_v2 }
  0x4b   :  { %212 = vmatprep.mubr.f32.mxu0 %v424_v0  ;;  %289 = vmatprep.mubr.f32.mxu1 %v424_v0 }
  0x4e   :  { %213 = vmatmul.mubr.f32.gmra.mxu0 %v55_v3  ;;  %290 = vmatmul.mubr.f32.gmra.mxu1 %v55_v3 }
 0x10a   :  { %v208_v15 = vpop.f32.mrf.mxu0  ;;  %v285_v16 = vpop.f32.mrf.mxu1 }
 0x10b   :  { %v209_v17 = vadd.f32 %v208_v15, %v125_v11  ;;  %v286_v18 = vadd.f32 %v285_v16, %v133_v12 }
 0x10c   :  { %v210_v19 = vpop.f32.mrf.mxu0  ;;  %v287_v0 = vpop.f32.mrf.mxu1 }
 0x10d   :  { %296 = vst [vmem:[#allocation8] sm:$0xff] %v209_v17  ;;  %298 = vst [vmem:[#allocation8 + $0x10] sm:$0xff] %v286_v18  ;;  %v211_v20 = vadd.f32 %v210_v19, %v129_v13  ;;  %v288_v21 = vadd.f32 %v287_v0, %v137_v14 }
 0x10e   :  { %v214_v22 = vpop.f32.mrf.mxu0  ;;  %v291_v23 = vpop.f32.mrf.mxu1 }
 0x10f   :  { %297 = vst [vmem:[#allocation8 + $0x8] sm:$0xff] %v211_v20  ;;  %299 = vst [vmem:[#allocation8 + $0x18] sm:$0xff] %v288_v21  ;;  %v215_v24 = vadd.f32 %v214_v22, %v125_v11  ;;  %v292_v25 = vadd.f32 %v291_v23, %v133_v12 }
 0x110   :  { %v216_v26 = vpop.f32.mrf.mxu0  ;;  %v293_v27 = vpop.f32.mrf.mxu1 }
 0x111   :  { %300 = vst [vmem:[#allocation8 + $0x20] sm:$0xff] %v215_v24  ;;  %302 = vst [vmem:[#allocation8 + $0x30] sm:$0xff] %v292_v25  ;;  %v217_v28 = vadd.f32 %v216_v26, %v129_v13  ;;  %v294_v29 = vadd.f32 %v293_v27, %v137_v14 }
 0x113   :  { %301 = vst [vmem:[#allocation8 + $0x28] sm:$0xff] %v217_v28  ;;  %303 = vst [vmem:[#allocation8 + $0x38] sm:$0xff] %v294_v29 }
 0x114   :  { %402 = shalt.err (!%p399_p5)
}
 0x115   :  { %315 = dma.vmem_to_hbm [thread:$0]  %s310_s2, 1024, %s471_s3, [#allocation4], %s418_s15, %s418_s15, %s419_s16  }
 0x116   :  { %415 = dma.done.wait [#allocation4], 1024  }
 0x117   :  { %416 = vsyncadd [#allocation4], 4294966272 }
 0x118   :  { %319 = vsyncpa [#allocation3], 1 }
 0x119   :  { %320 = vsyncpa [#allocation6], 1 }
 0x11a   :  { %321 = vsyncpa [#allocation4], 1 }

</bundles_post_ra>
